<compile_context>
chip_gen: v6e
topology: v6e:2x2x1
jax: 0.10.0
libtpu: 0.0.40
codegen_flags: <defaults>
</compile_context>

<pallas_src>
import math
import numpy as np
import jax
import jax.numpy as jnp
from jax import lax
from jax.experimental import pallas as pl
from jax.experimental.pallas import tpu as pltpu


# ---------------------------------------------------------------------------
# Wavelet filter banks (hard-coded pywt decomposition filters; deterministic).
# ---------------------------------------------------------------------------
def _dec_filters(name):
    if name in ("db2", "sym2"):               # sym2 == db2
        s3 = math.sqrt(3.0)
        d = 4.0 * math.sqrt(2.0)
        rec_lo = np.array([(1 + s3) / d, (3 + s3) / d, (3 - s3) / d, (1 - s3) / d],
                          dtype=np.float64)
        dec_lo = rec_lo[::-1].copy()
    elif name == "coif1":
        dec_lo = np.array([-0.01565572813546454, -0.0727326195128539,
                           0.38486484686420286, 0.8525720202122554,
                           0.3378976624578092, -0.0727326195128539],
                          dtype=np.float64)
    else:
        raise ValueError(name)
    L = len(dec_lo)
    # pywt quadrature mirror: dec_hi[k] = (-1)^(k+1) * dec_lo[L-1-k]  (L even)
    dec_hi = np.array([((-1.0) ** (k + 1)) * dec_lo[L - 1 - k] for k in range(L)],
                      dtype=np.float64)
    return dec_lo, dec_hi


def _afb_matrix(h_conv, n_in, n_keep):
    """Dense matrix F (n_keep, n_in) s.t. F @ x == strided correlation of the
    symmetrically padded signal with `h_conv` (pytorch_wavelets afb1d,
    mode='symmetric'), keeping only the first n_keep outputs ([..., :size] crop)."""
    L = len(h_conv)
    outsize = (n_in + L - 1) // 2                      # pywt.dwt_coeff_len
    p = 2 * (outsize - 1) - n_in + L                   # total pad
    pad_before = p // 2
    F = np.zeros((n_keep, n_in), dtype=np.float64)
    for j in range(n_keep):
        for k in range(L):
            i = 2 * j + k - pad_before
            m = i % (2 * n_in)                         # half-sample symmetric ext.
            src = m if m < n_in else 2 * n_in - 1 - m
            F[j, src] += h_conv[k]
    return F


def build_filters(H, W, dtype=jnp.float32):
    """Analysis matrices.
    Returns mh: (3, 2s, H)  rows = [height-HI ; height-LO]   (batched left-mult)
            gw: (W, 6s)     cols = [w0-LO|w0-HI | w1-LO|w1-HI | w2-LO|w2-HI]"""
    s = W // 2
    mh_list, gw_list = [], []
    for name in ("db2", "coif1", "sym2"):
        dec_lo, dec_hi = _dec_filters(name)
        h0 = dec_lo[::-1]                              # correlation kernels
        h1 = dec_hi[::-1]
        mh_hi = _afb_matrix(h1, H, s)                  # (s, H)
        mh_lo = _afb_matrix(h0, H, s)                  # (s, H)
        gw_lo = _afb_matrix(h0, W, s).T                # (W, s)
        gw_hi = _afb_matrix(h1, W, s).T                # (W, s)
        mh_list.append(np.concatenate([mh_hi, mh_lo], axis=0))   # (2s, H)
        gw_list.append(np.concatenate([gw_lo, gw_hi], axis=1))   # (W, 2s)
    mh = jnp.asarray(np.stack(mh_list), dtype=dtype)             # (3, 2s, H)
    gw = jnp.asarray(np.concatenate(gw_list, axis=1), dtype=dtype)  # (W, 6s)
    return mh, gw


# ---------------------------------------------------------------------------
# Pallas kernel: one (batch image, channel block) -> 3 wavelets x 3 HF bands.
# ---------------------------------------------------------------------------
def _wavegen_kernel(x_ref, mh_ref, gw_ref, o_ref):
    # x_ref : (1, cb, H, W)        input dtype (cast to compute dtype here)
    # mh_ref: (3, 2s, H)           compute dtype, rows [height-HI ; height-LO]
    # gw_ref: (W, 6s)              compute dtype, per wavelet cols [LO | HI]
    # o_ref : (1, 3, 1, 3*cb, s, s) output dtype; axis 3 enumerates (channel, band)
    cb = x_ref.shape[1]
    H = x_ref.shape[2]
    W = x_ref.shape[3]
    s = gw_ref.shape[1] // 6
    cdt = gw_ref.dtype

    # ---- width stage: one fused MXU matmul for all 3 wavelets ----------------
    # Channel block folded into the M dim: (cb*H, W) @ (W, 6s).  (free sublane
    # merge when H % 8 == 0; still correct otherwise, just a relayout.)
    x2 = x_ref[...].reshape(cb * H, W).astype(cdt)
    t = jnp.dot(x2, gw_ref[...], preferred_element_type=jnp.float32)   # (cb*H, 6s)
    t = t.astype(cdt).reshape(cb, H, 6 * s)                            # (cb, H, 6s)

    # ---- height stage: per wavelet, batched over the channel block ----------
    dn = (((2,), (1,)), ((0,), (0,)))          # (b, m, k) x (b, k, n) -> (b, m, n)
    for wv in range(3):                        # 3 wavelets: tiny static unroll
        mh_w = mh_ref[wv]                      # (2s, H)
        mh_hi = jnp.broadcast_to(mh_w[:s, :], (cb, s, H))
        mh_lo = jnp.broadcast_to(mh_w[s:, :], (cb, s, H))
        tw = t[:, :, 2 * s * wv: 2 * s * (wv + 1)]     # (cb, H, 2s) = [LoW | HiW]

        # Skip the unused LL quadrant: HI rows over both width halves,
        # LO rows only over the HiW half.
        r_hi = lax.dot_general(mh_hi, tw, dn,
                               preferred_element_type=jnp.float32)     # (cb, s, 2s)
        r_lo = lax.dot_general(mh_lo, tw[:, :, s:], dn,
                               preferred_element_type=jnp.float32)     # (cb, s, s)

        # Band order (pytorch_wavelets): 0=(LoW,HiH)=LH, 1=(HiW,LoH)=HL, 2=HH.
        bands = jnp.stack([r_hi[:, :, :s], r_lo, r_hi[:, :, s:]], axis=1)
        o_ref[0, wv, 0] = bands.reshape(3 * cb, s, s).astype(o_ref.dtype)


def _cdiv(a, b):
    return -(-a // b)


def wavegen_forward(x, *, compute_dtype=None, out_dtype=None):
    """WaveGen forward: x (N, C, H, W) -> (N, 9*C, W//2, W//2).

    compute_dtype: MXU dtype (default: bf16 if x is bf16 else f32; f32 preserves
                   the PyTorch module's numerics exactly, bf16 is the fast path).
    out_dtype:     output dtype (default: x.dtype).
    """
    N, C, H, W = x.shape
    s = W // 2
    if compute_dtype is None:
        compute_dtype = jnp.bfloat16 if x.dtype == jnp.bfloat16 else jnp.float32
    if out_dtype is None:
        out_dtype = x.dtype

    mh, gw = build_filters(H, W, compute_dtype)

    in_sz = jnp.dtype(x.dtype).itemsize
    cmp_sz = jnp.dtype(compute_dtype).itemsize
    out_sz = jnp.dtype(out_dtype).itemsize

    # --- generation-aware VMEM budget (v5e/v6e: 128 MiB, v7x: 64 MiB) --------
    try:
        vmem_cap = int(getattr(pltpu.get_tpu_info(), "vmem_capacity_bytes",
                               64 * 1024 * 1024))
    except Exception:
        vmem_cap = 64 * 1024 * 1024
    vmem_limit = max(16 * 2 ** 20, min(int(vmem_cap * 0.8), vmem_cap - 8 * 2 ** 20))
    budget = vmem_limit - 4 * 2 ** 20            # compiler headroom

    def step_bytes(cb):
        x_blk = cb * H * W * in_sz               # input block   (double buffered)
        o_blk = 9 * cb * s * s * out_sz          # output block  (double buffered)
        x_cast = cb * H * W * cmp_sz             # x2 in compute dtype
        t_all = cb * H * 6 * s * (4 + cmp_sz)    # f32 matmul result + cast copy
        mh_b = 2 * cb * s * H * cmp_sz           # broadcast hi/lo height filters
        r_tmp = 6 * cb * s * s * 4               # r_hi + r_lo + stacked bands
        filt = (3 * 2 * s * H + W * 6 * s) * cmp_sz
        return 2 * (x_blk + o_blk + filt) + x_cast + t_all + mh_b + r_tmp

    fixed = step_bytes(0)
    per_cb = max(step_bytes(1) - fixed, 1)
    cb = int(max(1, min(C, (budget - fixed) // per_cb)))
    # keep >= 2 grid steps so the second TensorCore (v7x megacore) has work
    if N * _cdiv(C, cb) < 2 and C >= 2:
        cb = _cdiv(C, 2)
    num_cb = _cdiv(C, cb)
    Cp = num_cb * cb
    if Cp != C:                                  # cb need not divide C: pad channels
        x = jnp.pad(x, ((0, 0), (0, Cp - C), (0, 0), (0, 0)))
    vmem_limit = int(min(vmem_cap, max(vmem_limit, step_bytes(cb) + 4 * 2 ** 20)))

    flops = (2 * N * Cp * H * W * 6 * s          # fused width matmul
             + 18 * N * Cp * H * s * s)          # height matmuls (LL skipped)
    bytes_accessed = (N * Cp * H * W * in_sz + N * 9 * Cp * s * s * out_sz
                      + N * num_cb * (3 * 2 * s * H + W * 6 * s) * cmp_sz)

    out = pl.pallas_call(
        _wavegen_kernel,
        out_shape=jax.ShapeDtypeStruct((N, 3, num_cb, 3 * cb, s, s), out_dtype),
        grid=(N, num_cb),
        in_specs=[
            pl.BlockSpec((1, cb, H, W), lambda n, c: (n, c, 0, 0)),
            pl.BlockSpec((3, 2 * s, H), lambda n, c: (0, 0, 0)),
            pl.BlockSpec((W, 6 * s), lambda n, c: (0, 0)),
        ],
        out_specs=pl.BlockSpec((1, 3, 1, 3 * cb, s, s),
                               lambda n, c: (n, 0, c, 0, 0, 0)),
        compiler_params=pltpu.CompilerParams(
            dimension_semantics=("parallel", "parallel"),
            vmem_limit_bytes=vmem_limit),
        cost_estimate=pl.CostEstimate(flops=flops, transcendentals=0,
                                      bytes_accessed=bytes_accessed),
    )(x, mh, gw)

    # (N, 3, num_cb, 3*cb, s, s) flattens row-major to (N, 3, Cp, 3, s, s) and then
    # to (N, 9C, s, s) with channel = w*3C + c*3 + band -> metadata-only reshapes.
    out = out.reshape(N, 3, Cp, 3, s, s)
    if Cp != C:
        out = out[:, :, :C]
    return out.reshape(N, 9 * C, s, s)


# ---------------------------------------------------------------------------
# Host (numpy, float64) reference for the self-check.
# Band order / padding follow pytorch_wavelets AFB2D (LH, HL, HH per channel).
# ---------------------------------------------------------------------------
def _reference_f64(x_np):
    N, C, H, W = x_np.shape
    s = W // 2
    out = np.zeros((N, 3, C, 3, s, s), dtype=np.float64)
    for wi, name in enumerate(("db2", "coif1", "sym2")):
        dec_lo, dec_hi = _dec_filters(name)
        h0 = dec_lo[::-1]
        h1 = dec_hi[::-1]
        mh_hi = _afb_matrix(h1, H, s)
        mh_lo = _afb_matrix(h0, H, s)
        gw_lo = _afb_matrix(h0, W, s)                  # (s, W)
        gw_hi = _afb_matrix(h1, W, s)                  # (s, W)
        t_lo = np.einsum('nchw,sw->nchs', x_np, gw_lo)
        t_hi = np.einsum('nchw,sw->nchs', x_np, gw_hi)
        out[:, wi, :, 0] = np.einsum('th,nchs->ncts', mh_hi, t_lo)   # LH
        out[:, wi, :, 1] = np.einsum('th,nchs->ncts', mh_lo, t_hi)   # HL
        out[:, wi, :, 2] = np.einsum('th,nchs->ncts', mh_hi, t_hi)   # HH
    return out.reshape(N, 9 * C, s, s)


if __name__ == "__main__":
    key = jax.random.PRNGKey(0)
    x = jax.random.normal(key, (2, 4, 16, 16), dtype=jnp.float32)   # (N, C, H, W)

    # f32 path (exact semantics of the PyTorch module)
    y = jax.block_until_ready(jax.jit(wavegen_forward)(x))
    assert y.shape == (2, 36, 8, 8), y.shape

    y_ref = _reference_f64(np.asarray(x, dtype=np.float64))
    err = float(np.max(np.abs(np.asarray(y).astype(np.float64) - y_ref)))
    assert err < 5e-4, f"f32 path mismatch vs reference: {err}"

    # bf16-compute / bf16-output fast path (review item): f32 accumulation,
    # looser tolerance purely due to bf16 rounding.
    f_bf16 = jax.jit(lambda a: wavegen_forward(a, compute_dtype=jnp.bfloat16,
                                               out_dtype=jnp.bfloat16))
    y_bf = jax.block_until_ready(f_bf16(x))
    err_bf = float(np.max(np.abs(np.asarray(y_bf).astype(np.float64) - y_ref)))
    assert err_bf < 2e-1, f"bf16 path mismatch vs reference: {err_bf}"

    print("KERNEL_OK")
</pallas_src>

<mosaic_0001>
module attributes {stable_mosaic.version = 11 : i64} {
  func.func @_wavegen_kernel(%arg0: i32, %arg1: i32, %arg2: memref<1x4x16x16xf32, #tpu.memory_space<vmem>>, %arg3: memref<3x16x16xf32, #tpu.memory_space<vmem>>, %arg4: memref<16x48xf32, #tpu.memory_space<vmem>>, %arg5: memref<1x3x1x12x8x8xf32, #tpu.memory_space<vmem>>) attributes {dimension_semantics = [#tpu.dimension_semantics<parallel>, #tpu.dimension_semantics<parallel>], iteration_bounds = array<i64: 2, 1>, scalar_prefetch = 0 : i64, scratch_operands = 0 : i64, tpu.core_type = #tpu.core_type<tc>, window_params = [{transform_indices = @transform_0, window_bounds = array<i64: 1, 4, 16, 16>}, {pipeline_mode = #tpu.pipeline_mode<synchronous>, transform_indices = @transform_1, window_bounds = array<i64: 3, 16, 16>}, {pipeline_mode = #tpu.pipeline_mode<synchronous>, transform_indices = @transform_2, window_bounds = array<i64: 16, 48>}, {transform_indices = @transform_3, window_bounds = array<i64: 1, 3, 1, 12, 8, 8>}]} {
    %c0 = arith.constant 0 : index
    %c0_0 = arith.constant 0 : index
    %c0_1 = arith.constant 0 : index
    %c0_2 = arith.constant 0 : index
    %0 = vector.load %arg2[%c0, %c0_0, %c0_1, %c0_2] : memref<1x4x16x16xf32, #tpu.memory_space<vmem>>, vector<1x4x16x16xf32>
    %1 = vector.shape_cast %0 : vector<1x4x16x16xf32> to vector<64x16xf32>
    %c0_3 = arith.constant 0 : index
    %c0_4 = arith.constant 0 : index
    %2 = vector.load %arg4[%c0_3, %c0_4] : memref<16x48xf32, #tpu.memory_space<vmem>>, vector<16x48xf32>
    %cst = arith.constant dense<0.000000e+00> : vector<64x48xf32>
    %3 = tpu.matmul %1, %2, %cst {dimension_numbers = #tpu.dot_dimension_numbers<[1], [0], [0], [1], [0, 0, 1, 1], [], []>} : vector<64x16xf32>, vector<16x48xf32>, vector<64x48xf32> -> vector<64x48xf32>
    %4 = vector.shape_cast %3 : vector<64x48xf32> to vector<4x16x48xf32>
    %c0_5 = arith.constant 0 : index
    %c0_6 = arith.constant 0 : index
    %c0_7 = arith.constant 0 : index
    %5 = vector.load %arg3[%c0_5, %c0_6, %c0_7] : memref<3x16x16xf32, #tpu.memory_space<vmem>>, vector<1x16x16xf32>
    %6 = vector.shape_cast %5 : vector<1x16x16xf32> to vector<16x16xf32>
    %7 = vector.extract_strided_slice %6 {offsets = [0, 0], sizes = [8, 16], strides = [1, 1]} : vector<16x16xf32> to vector<8x16xf32>
    %8 = vector.shape_cast %7 : vector<8x16xf32> to vector<1x8x16xf32>
    %9 = vector.broadcast %8 : vector<1x8x16xf32> to vector<4x8x16xf32>
    %10 = vector.extract_strided_slice %6 {offsets = [8, 0], sizes = [8, 16], strides = [1, 1]} : vector<16x16xf32> to vector<8x16xf32>
    %11 = vector.shape_cast %10 : vector<8x16xf32> to vector<1x8x16xf32>
    %12 = vector.broadcast %11 : vector<1x8x16xf32> to vector<4x8x16xf32>
    %13 = vector.extract_strided_slice %4 {offsets = [0, 0, 0], sizes = [4, 16, 16], strides = [1, 1, 1]} : vector<4x16x48xf32> to vector<4x16x16xf32>
    %cst_8 = arith.constant dense<0.000000e+00> : vector<4x8x16xf32>
    %14 = tpu.matmul %9, %13, %cst_8 {dimension_numbers = #tpu.dot_dimension_numbers<[2], [1], [1], [2], [0, 0, 0, 1, 1, 2], [0], [0]>} : vector<4x8x16xf32>, vector<4x16x16xf32>, vector<4x8x16xf32> -> vector<4x8x16xf32>
    %15 = vector.extract_strided_slice %13 {offsets = [0, 0, 8], sizes = [4, 16, 8], strides = [1, 1, 1]} : vector<4x16x16xf32> to vector<4x16x8xf32>
    %cst_9 = arith.constant dense<0.000000e+00> : vector<4x8x8xf32>
    %16 = tpu.matmul %12, %15, %cst_9 {dimension_numbers = #tpu.dot_dimension_numbers<[2], [1], [1], [2], [0, 0, 0, 1, 1, 2], [0], [0]>} : vector<4x8x16xf32>, vector<4x16x8xf32>, vector<4x8x8xf32> -> vector<4x8x8xf32>
    %17 = vector.extract_strided_slice %14 {offsets = [0, 0, 0], sizes = [4, 8, 8], strides = [1, 1, 1]} : vector<4x8x16xf32> to vector<4x8x8xf32>
    %18 = vector.extract_strided_slice %14 {offsets = [0, 0, 8], sizes = [4, 8, 8], strides = [1, 1, 1]} : vector<4x8x16xf32> to vector<4x8x8xf32>
    %19 = vector.shape_cast %17 : vector<4x8x8xf32> to vector<4x1x8x8xf32>
    %20 = vector.shape_cast %16 : vector<4x8x8xf32> to vector<4x1x8x8xf32>
    %21 = vector.shape_cast %18 : vector<4x8x8xf32> to vector<4x1x8x8xf32>
    %22 = tpu.concatenate %19, %20, %21 in 1 : vector<4x1x8x8xf32>, vector<4x1x8x8xf32>, vector<4x1x8x8xf32> -> vector<4x3x8x8xf32>
    %23 = vector.shape_cast %22 : vector<4x3x8x8xf32> to vector<12x8x8xf32>
    %c0_10 = arith.constant 0 : index
    %c0_11 = arith.constant 0 : index
    %c0_12 = arith.constant 0 : index
    %c0_13 = arith.constant 0 : index
    %c0_14 = arith.constant 0 : index
    %c0_15 = arith.constant 0 : index
    %24 = vector.load %arg5[%c0_10, %c0_11, %c0_12, %c0_13, %c0_14, %c0_15] : memref<1x3x1x12x8x8xf32, #tpu.memory_space<vmem>>, vector<1x1x1x12x8x8xf32>
    %25 = vector.shape_cast %24 : vector<1x1x1x12x8x8xf32> to vector<12x8x8xf32>
    %26 = vector.shape_cast %23 : vector<12x8x8xf32> to vector<1x1x1x12x8x8xf32>
    tpu.vector_store %arg5[%c0_10, %c0_11, %c0_12, %c0_13, %c0_14, %c0_15], %26 {strides = array<i32>} : memref<1x3x1x12x8x8xf32, #tpu.memory_space<vmem>>, vector<1x1x1x12x8x8xf32>,
    %c1 = arith.constant 1 : index
    %c0_16 = arith.constant 0 : index
    %c0_17 = arith.constant 0 : index
    %27 = vector.load %arg3[%c1, %c0_16, %c0_17] : memref<3x16x16xf32, #tpu.memory_space<vmem>>, vector<1x16x16xf32>
    %28 = vector.shape_cast %27 : vector<1x16x16xf32> to vector<16x16xf32>
    %29 = vector.extract_strided_slice %28 {offsets = [0, 0], sizes = [8, 16], strides = [1, 1]} : vector<16x16xf32> to vector<8x16xf32>
    %30 = vector.shape_cast %29 : vector<8x16xf32> to vector<1x8x16xf32>
    %31 = vector.broadcast %30 : vector<1x8x16xf32> to vector<4x8x16xf32>
    %32 = vector.extract_strided_slice %28 {offsets = [8, 0], sizes = [8, 16], strides = [1, 1]} : vector<16x16xf32> to vector<8x16xf32>
    %33 = vector.shape_cast %32 : vector<8x16xf32> to vector<1x8x16xf32>
    %34 = vector.broadcast %33 : vector<1x8x16xf32> to vector<4x8x16xf32>
    %35 = vector.extract_strided_slice %4 {offsets = [0, 0, 16], sizes = [4, 16, 16], strides = [1, 1, 1]} : vector<4x16x48xf32> to vector<4x16x16xf32>
    %cst_18 = arith.constant dense<0.000000e+00> : vector<4x8x16xf32>
    %36 = tpu.matmul %31, %35, %cst_18 {dimension_numbers = #tpu.dot_dimension_numbers<[2], [1], [1], [2], [0, 0, 0, 1, 1, 2], [0], [0]>} : vector<4x8x16xf32>, vector<4x16x16xf32>, vector<4x8x16xf32> -> vector<4x8x16xf32>
    %37 = vector.extract_strided_slice %35 {offsets = [0, 0, 8], sizes = [4, 16, 8], strides = [1, 1, 1]} : vector<4x16x16xf32> to vector<4x16x8xf32>
    %cst_19 = arith.constant dense<0.000000e+00> : vector<4x8x8xf32>
    %38 = tpu.matmul %34, %37, %cst_19 {dimension_numbers = #tpu.dot_dimension_numbers<[2], [1], [1], [2], [0, 0, 0, 1, 1, 2], [0], [0]>} : vector<4x8x16xf32>, vector<4x16x8xf32>, vector<4x8x8xf32> -> vector<4x8x8xf32>
    %39 = vector.extract_strided_slice %36 {offsets = [0, 0, 0], sizes = [4, 8, 8], strides = [1, 1, 1]} : vector<4x8x16xf32> to vector<4x8x8xf32>
    %40 = vector.extract_strided_slice %36 {offsets = [0, 0, 8], sizes = [4, 8, 8], strides = [1, 1, 1]} : vector<4x8x16xf32> to vector<4x8x8xf32>
    %41 = vector.shape_cast %39 : vector<4x8x8xf32> to vector<4x1x8x8xf32>
    %42 = vector.shape_cast %38 : vector<4x8x8xf32> to vector<4x1x8x8xf32>
    %43 = vector.shape_cast %40 : vector<4x8x8xf32> to vector<4x1x8x8xf32>
    %44 = tpu.concatenate %41, %42, %43 in 1 : vector<4x1x8x8xf32>, vector<4x1x8x8xf32>, vector<4x1x8x8xf32> -> vector<4x3x8x8xf32>
    %45 = vector.shape_cast %44 : vector<4x3x8x8xf32> to vector<12x8x8xf32>
    %c0_20 = arith.constant 0 : index
    %c1_21 = arith.constant 1 : index
    %c0_22 = arith.constant 0 : index
    %c0_23 = arith.constant 0 : index
    %c0_24 = arith.constant 0 : index
    %c0_25 = arith.constant 0 : index
    %46 = vector.load %arg5[%c0_20, %c1_21, %c0_22, %c0_23, %c0_24, %c0_25] : memref<1x3x1x12x8x8xf32, #tpu.memory_space<vmem>>, vector<1x1x1x12x8x8xf32>
    %47 = vector.shape_cast %46 : vector<1x1x1x12x8x8xf32> to vector<12x8x8xf32>
    %48 = vector.shape_cast %45 : vector<12x8x8xf32> to vector<1x1x1x12x8x8xf32>
    tpu.vector_store %arg5[%c0_20, %c1_21, %c0_22, %c0_23, %c0_24, %c0_25], %48 {strides = array<i32>} : memref<1x3x1x12x8x8xf32, #tpu.memory_space<vmem>>, vector<1x1x1x12x8x8xf32>,
    %c2 = arith.constant 2 : index
    %c0_26 = arith.constant 0 : index
    %c0_27 = arith.constant 0 : index
    %49 = vector.load %arg3[%c2, %c0_26, %c0_27] : memref<3x16x16xf32, #tpu.memory_space<vmem>>, vector<1x16x16xf32>
    %50 = vector.shape_cast %49 : vector<1x16x16xf32> to vector<16x16xf32>
    %51 = vector.extract_strided_slice %50 {offsets = [0, 0], sizes = [8, 16], strides = [1, 1]} : vector<16x16xf32> to vector<8x16xf32>
    %52 = vector.shape_cast %51 : vector<8x16xf32> to vector<1x8x16xf32>
    %53 = vector.broadcast %52 : vector<1x8x16xf32> to vector<4x8x16xf32>
    %54 = vector.extract_strided_slice %50 {offsets = [8, 0], sizes = [8, 16], strides = [1, 1]} : vector<16x16xf32> to vector<8x16xf32>
    %55 = vector.shape_cast %54 : vector<8x16xf32> to vector<1x8x16xf32>
    %56 = vector.broadcast %55 : vector<1x8x16xf32> to vector<4x8x16xf32>
    %57 = vector.extract_strided_slice %4 {offsets = [0, 0, 32], sizes = [4, 16, 16], strides = [1, 1, 1]} : vector<4x16x48xf32> to vector<4x16x16xf32>
    %cst_28 = arith.constant dense<0.000000e+00> : vector<4x8x16xf32>
    %58 = tpu.matmul %53, %57, %cst_28 {dimension_numbers = #tpu.dot_dimension_numbers<[2], [1], [1], [2], [0, 0, 0, 1, 1, 2], [0], [0]>} : vector<4x8x16xf32>, vector<4x16x16xf32>, vector<4x8x16xf32> -> vector<4x8x16xf32>
    %59 = vector.extract_strided_slice %57 {offsets = [0, 0, 8], sizes = [4, 16, 8], strides = [1, 1, 1]} : vector<4x16x16xf32> to vector<4x16x8xf32>
    %cst_29 = arith.constant dense<0.000000e+00> : vector<4x8x8xf32>
    %60 = tpu.matmul %56, %59, %cst_29 {dimension_numbers = #tpu.dot_dimension_numbers<[2], [1], [1], [2], [0, 0, 0, 1, 1, 2], [0], [0]>} : vector<4x8x16xf32>, vector<4x16x8xf32>, vector<4x8x8xf32> -> vector<4x8x8xf32>
    %61 = vector.extract_strided_slice %58 {offsets = [0, 0, 0], sizes = [4, 8, 8], strides = [1, 1, 1]} : vector<4x8x16xf32> to vector<4x8x8xf32>
    %62 = vector.extract_strided_slice %58 {offsets = [0, 0, 8], sizes = [4, 8, 8], strides = [1, 1, 1]} : vector<4x8x16xf32> to vector<4x8x8xf32>
    %63 = vector.shape_cast %61 : vector<4x8x8xf32> to vector<4x1x8x8xf32>
    %64 = vector.shape_cast %60 : vector<4x8x8xf32> to vector<4x1x8x8xf32>
    %65 = vector.shape_cast %62 : vector<4x8x8xf32> to vector<4x1x8x8xf32>
    %66 = tpu.concatenate %63, %64, %65 in 1 : vector<4x1x8x8xf32>, vector<4x1x8x8xf32>, vector<4x1x8x8xf32> -> vector<4x3x8x8xf32>
    %67 = vector.shape_cast %66 : vector<4x3x8x8xf32> to vector<12x8x8xf32>
    %c0_30 = arith.constant 0 : index
    %c2_31 = arith.constant 2 : index
    %c0_32 = arith.constant 0 : index
    %c0_33 = arith.constant 0 : index
    %c0_34 = arith.constant 0 : index
    %c0_35 = arith.constant 0 : index
    %68 = vector.load %arg5[%c0_30, %c2_31, %c0_32, %c0_33, %c0_34, %c0_35] : memref<1x3x1x12x8x8xf32, #tpu.memory_space<vmem>>, vector<1x1x1x12x8x8xf32>
    %69 = vector.shape_cast %68 : vector<1x1x1x12x8x8xf32> to vector<12x8x8xf32>
    %70 = vector.shape_cast %67 : vector<12x8x8xf32> to vector<1x1x1x12x8x8xf32>
    tpu.vector_store %arg5[%c0_30, %c2_31, %c0_32, %c0_33, %c0_34, %c0_35], %70 {strides = array<i32>} : memref<1x3x1x12x8x8xf32, #tpu.memory_space<vmem>>, vector<1x1x1x12x8x8xf32>,
    return
  }
  func.func @transform_0(%arg0: i32, %arg1: i32) -> (i32, i32, i32, i32) {
    %c0_i32 = arith.constant 0 : i32
    %c0_i32_0 = arith.constant 0 : i32
    %c0_i32_1 = arith.constant 0 : i32
    return %arg0, %arg1, %c0_i32, %c0_i32_0 : i32, i32, i32, i32
  }
  func.func @transform_1(%arg0: i32, %arg1: i32) -> (i32, i32, i32) {
    %c0_i32 = arith.constant 0 : i32
    %c0_i32_0 = arith.constant 0 : i32
    %c0_i32_1 = arith.constant 0 : i32
    %c0_i32_2 = arith.constant 0 : i32
    return %c0_i32, %c0_i32_0, %c0_i32_1 : i32, i32, i32
  }
  func.func @transform_2(%arg0: i32, %arg1: i32) -> (i32, i32) {
    %c0_i32 = arith.constant 0 : i32
    %c0_i32_0 = arith.constant 0 : i32
    %c0_i32_1 = arith.constant 0 : i32
    return %c0_i32, %c0_i32_0 : i32, i32
  }
  func.func @transform_3(%arg0: i32, %arg1: i32) -> (i32, i32, i32, i32, i32, i32) {
    %c0_i32 = arith.constant 0 : i32
    %c0_i32_0 = arith.constant 0 : i32
    %c0_i32_1 = arith.constant 0 : i32
    %c0_i32_2 = arith.constant 0 : i32
    %c0_i32_3 = arith.constant 0 : i32
    return %arg0, %c0_i32, %arg1, %c0_i32_0, %c0_i32_1, %c0_i32_2 : i32, i32, i32, i32, i32, i32
  }
}

</mosaic_0001>

<bundles_post_ra>
// kernel: wavegen_forward.1
= control target key start
LH: loop header
LB: loop body
LE: loop exit
PB: predicated region body
PF: predicated region fallthrough
CT: control target
= control target key end

     0   :  { %8 = vsyncpa [#allocation3], 0  ;;  %s3422_s0 = inlined_call_operand.hbm [shape: f32[2,4,16,16], index: 0, kind: input, shape index: {}]   ;;  %s3423_s1 = inlined_call_operand.hbm [shape: f32[3,16,16], index: 1, kind: input, shape index: {}]   ;;  %s3424_s2 = inlined_call_operand.hbm [shape: f32[16,48], index: 2, kind: input, shape index: {}]   ;;  %s3425_s3 = inlined_call_operand.vmem [shape: f32[2,3,1,12,8,8], index: 3, kind: output, shape index: {}]  }
   0x1   :  { %10 = vsyncpa [#allocation3 + $0x1], 0 }
   0x2   :  { %11 = vsyncpa [#allocation5], 0  ;;  %s3019_s12 = smov 0   ;;  %s3021_s13 = smov 0  }
   0x3   :  { %s3023_s14 = smov 0   ;;  %s3025_s15 = smov 0  }
   0x4   :  { %s3027_s16 = smov 0   ;;  %s3029_s17 = smov 0  }
   0x5 LB: > { %s2426_s18 = sadd.s32 4294967295, %s2985_s17   ;;  %p51_p0 = scmp.ne.s32.totalorder %s2969_s13, %s2965_s12  ;;  %s2985_s17 = sphi %s3029_s17, %s17_s17   ;;  %s2981_s16 = sphi %s3027_s16, %s3435_s16   ;;  %s2977_s15 = sphi %s3025_s15, %s3434_s15   ;;  %s2973_s14 = sphi %s3023_s14, %s3433_s14   ;;  %s2969_s13 = sphi %s3021_s13, %s3432_s13   ;;  %s2965_s12 = sphi %s3019_s12, %s3431_s12  }
   0x6   : > { %p3049_p1 = scmp.eq.s32.totalorder %s2426_s18, 0  ;;  %p2428_p2 = scmp.ge.s32.totalorder %s2985_s17, 1 }
   0x7   : > { %p132_p3 = scmp.lt.s32.totalorder %s2985_s17, 3  ;;  %s2987_s22 = smov [#allocation4]  }
   0x8   : > { %p3057_p4 = por %p3049_p1, %p51_p0  ;;  %s144_s23 = sshll.u32 %s2987_s22, 4  ;;  %s145_s23 = int_to_ptr.vmem [resolvable:$true] %s144_s23 }
   0x9   : > { %p3061_p5 = pnand %p2428_p2, %p132_p3  ;;  %s2988_s25 = smov [#allocation6]  }
   0xa   : > { %s157_s26 = sshll.u32 %s2988_s25, 4  ;;  %s2862_s27 = scalar_lea.vmem %s145_s23, 768  ;;  %s158_s26 = int_to_ptr.vmem [resolvable:$true] %s157_s26 }
   0xb   : > { %p2776_p6 = pneg %p3061_p5  ;;  %p2863_p9 = scmp.ne.s32.totalorder %s145_s23, %s2862_s27 }
   0xc   : > { %p2870_p12 = scmp.lt.s32.totalorder %s145_s23, %s145_s23  ;;  %p2871_p13 = scmp.lt.s32.totalorder %s2862_s27, %s2862_s27 }
   0xd   : > { %p3069_p7 = pnand %p2776_p6, %p3049_p1 }
   0xe   : > { %p2872_p0 = por %p2871_p13, %p2870_p12 }
   0xf   : > { %p2853_p8 = pneg %p3069_p7 }
  0x11   : > { %p2865_p10 = pnand %p2863_p9, %p2853_p8 }
  0x13   : > { %p2866_p11 = pneg %p2865_p10 }
  0x15   : > { %p2873_p2 = pnand %p2872_p0, %p2866_p11 }
  0x17   : > { %2876 = shalt.err (!%p2873_p2)
}
  0x18   : > { %s2989_s28 = smov 128   ;;  %s2990_s29 = smov 8  }
  0x19   : > { %2779 = dma.hbm_to_vmem [thread:$0]  (!%p3069_p7), %s3423_s1, 768, %s145_s23, [#allocation5], %s2989_s28, %s2989_s28, %s2990_s29  }
  0x1a   : > { %s2888_s5 = scalar_lea.vmem %s158_s26, 256  ;;  %p2896_p10 = scmp.lt.s32.totalorder %s158_s26, %s158_s26 }
  0x1b   : > { %p2889_p3 = scmp.ne.s32.totalorder %s158_s26, %s2888_s5  ;;  %p2897_p11 = scmp.lt.s32.totalorder %s2888_s5, %s2888_s5 }
  0x1d   : > { %p2891_p6 = pnand %p2889_p3, %p2853_p8  ;;  %p2898_p12 = por %p2897_p11, %p2896_p10 }
  0x1f   : > { %p2892_p9 = pneg %p2891_p6 }
  0x21   : > { %p2899_p13 = pnand %p2898_p12, %p2892_p9 }
  0x23   : > { %2902 = shalt.err (!%p2899_p13)
}
  0x24   : > { %2782 = dma.hbm_to_vmem [thread:$0]  (!%p3069_p7), %s3424_s2, 256, %s158_s26, [#allocation5], %s2989_s28, %s2989_s28, %s2990_s29  }
  0x25   : > { %s29_s8 = sadd.s32 1, %s2981_s16  ;;  %s38_s9 = sadd.s32 1, %s2973_s14 }
  0x26   : > { %p31_p8 = scmp.ge.s32.totalorder %s29_s8, 2  ;;  %p45_p0 = scmp.ne.s32.totalorder %s2973_s14, %s2969_s13 }
  0x27   : > { %p46_p2 = scmp.eq.s32.totalorder %s2985_s17, 0  ;;  %p2789_p3 = scmp.lt.s32.totalorder %s2985_s17, 2 }
  0x28   : > { %s3437_s8 = smov (%p31_p8, %s29_s8), 0  ;;  %s171_s10 = sand.u32 1, %s2973_s14  }
  0x29   : > { %p47_p6 = por %p46_p2, %p45_p0  ;;  %s33_s11 = ssub.s32 %s2981_s16, %s3437_s8 }
  0x2a   : > { %p36_p9 = scmp.eq.s32.totalorder %s33_s11, 0  ;;  %s2432_s12 = sshll.u32 %s171_s10, 6 }
  0x2b   : > { %s2498_s18 = sshll.u32 %s2981_s16, 10  ;;  %s175_s26 = scalar_lea.vmem [#allocation2], %s2432_s12 }
  0x2c   : > { %s3110_s22 = scalar_select %p36_p9, %s2973_s14, %s38_s9  }
  0x2d   : > { %s184_s25 = scalar_lea.hbm %s3422_s0, %s2498_s18  ;;  %s185_s27 = sshll.u32 %s175_s26, 4  ;;  %s186_s27 = int_to_ptr.vmem [resolvable:$true] %s185_s27 }
  0x2e   : > { %p3117_p7 = pnand %p2789_p3, %p47_p6  ;;  %s172_s4 = scalar_lea.sflag [#allocation3], %s171_s10 }
  0x2f   : > { %s2916_s5 = scalar_lea.vmem %s186_s27, 1024  ;;  %s2991_s6 = smov [#allocation2]  }
  0x30   : > { %p2905_p10 = pneg %p3117_p7  ;;  %p2917_p11 = scmp.ne.s32.totalorder %s186_s27, %s2916_s5 }
  0x31   : > { %s2921_s7 = sshll.u32 %s2991_s6, 4  ;;  %s2922_s7 = int_to_ptr.vmem [resolvable:$false] %s2921_s7 }
  0x32   : > { %p2919_p12 = pnand %p2917_p11, %p2905_p10  ;;  %s2923_s9 = scalar_lea.vmem %s2922_s7, 2048 }
  0x33   : > { %p2924_p8 = scmp.lt.s32.totalorder %s186_s27, %s2922_s7  ;;  %p2925_p0 = scmp.lt.s32.totalorder %s2923_s9, %s2916_s5 }
  0x34   : > { %p2920_p13 = pneg %p2919_p12 }
  0x35   : > { %p2926_p2 = por %p2925_p0, %p2924_p8 }
  0x37   : > { %p2927_p9 = pnand %p2926_p2, %p2920_p13 }
  0x39   : > { %2930 = shalt.err (!%p2927_p9)
}
  0x3a   : > { %2786 = dma.hbm_to_vmem [thread:$0]  (!%p3117_p7), %s184_s25, 1024, %s186_s27, %s172_s4, %s2989_s28, %s2989_s28, %s2990_s29  }
  0x3b   : > { %197 = sbr.rel (%p3061_p5) target bundleno = 763 (0x2fb), region = 32  ;;  %s199_s10 = sand.u32 (!%p3061_p5), 1, %s2969_s13  }
  0x3c   : > { %s2436_s11 = sshll.u32 (!%p3061_p5), %s199_s10, 6  ;;  %s200_s12 = scalar_lea.sflag (!%p3061_p5), [#allocation3], %s199_s10 }
  0x3d   : > { %s203_s18 = scalar_lea.vmem (!%p3061_p5), [#allocation2], %s2436_s11 }
  0x40   : > { %2956 = dma.done.wait (%p3057_p4), %s200_s12, 1024  }
  0x41   : > { %2958 = vsyncadd (%p3057_p4), %s200_s12, 4294966272 }
  0x42   : > { %2960 = dma.done.wait (%p3049_p1), [#allocation5], 1024  }
  0x43   : > { %2962 = vsyncadd (%p3049_p1), [#allocation5], 4294966272  ;;  %vm258_vm0 = vcmask 130048   ;;  %v257_v0 = vld [vmem:[#allocation6 + $0x8] sm:$0xff]  ;;  %v256_v1 = vld [vmem:[#allocation6] sm:$0xff]  ;;  %v2992_v10 = vmov 0.0  }
  0x44   : > { %v248_v2 = vld [vmem:[%s203_s18] sm:$0xff]  ;;  %2581 = vmatprep.subr.mxu0 %v257_v0  ;;  %v249_v3 = vld [vmem:[%s203_s18 + $0x8] sm:$0xff]  ;;  %v250_v4 = vld [vmem:[%s203_s18 + $0x10] sm:$0xff]  ;;  %2597 = vmatprep.subr.mxu1 %v2992_v10  ;;  %vm2993_vm1 = vmmov 0   ;;  %s2994_s19 = smov 120   ;;  %s2995_s20 = smov 112  }
  0x45   : > { %2585 = vmatprep.mubr.msk.f32.mxu0 %vm258_vm0, %v248_v2  ;;  %2582 = vmatpush3.msra.mxu0 %v257_v0  ;;  %v251_v5 = vld [vmem:[%s203_s18 + $0x18] sm:$0xff]  ;;  %v252_v6 = vld [vmem:[%s203_s18 + $0x20] sm:$0xff]  ;;  %v253_v7 = vld [vmem:[%s203_s18 + $0x28] sm:$0xff]  ;;  %s2996_s21 = smov 104   ;;  %s2997_s28 = smov 96   ;;  %vm1004_vm2 = vcmask 64512  }
  0x46   : > { %2583 = vmatprep.subr.mxu0 %v256_v1  ;;  %v254_v8 = vld [vmem:[%s203_s18 + $0x30] sm:$0xff]  ;;  %v255_v9 = vld [vmem:[%s203_s18 + $0x38] sm:$0xff]  ;;  %2601 = vmatprep.mubr.msk.f32.mxu1 %vm2993_vm1, %v2992_v10  ;;  %v388_v12 = vld [vmem:[#allocation4] sm:$0xff]  ;;  %s2998_s29 = smov 88   ;;  %p239_p1 = scmp.lt.s32.totalorder %s2977_s15, 1 }
  0x47   : > { %2584 = vmatpush3.msra.mxu0 %v256_v1  ;;  %v389_v21 = vld [vmem:[#allocation4 + $0x8] sm:$0xff]  ;;  %v1018_v42 = vld [vmem:[#allocation4 + $0x10] sm:$0xff]  ;;  %v1019_v49 = vld [vmem:[#allocation4 + $0x18] sm:$0xff] }
  0x48   : > { %2586 = vmatmul.mubr.msk.f32.vlgmr.msra.gmra.mxu0 %vm258_vm0, %v249_v3  ;;  %2625 = vmatprep.subr.mxu0 %v2992_v10  ;;  %v1664_v56 = vld [vmem:[#allocation4 + $0x20] sm:$0xff]  ;;  %s3439_s15 = smov (!%p239_p1, %s2977_s15), 1  ;;  %v1665_v62 = vld [vmem:[#allocation4 + $0x28] sm:$0xff] }
  0x49   : > { %2588 = vmatprep.mubr.msk.f32.mxu0 %vm258_vm0, %v250_v4  ;;  %s2765_s23 = smul.u32 288, %s3439_s15 }
  0x4b   : > { %s3304_s26 = scalar_lea.vmem %s3425_s3, %s2765_s23 }
  0x4c   : > { %2589 = vmatmul.mubr.msk.f32.gmra.mxu0 %vm258_vm0, %v251_v5 }
  0x4d   : > { %2591 = vmatprep.mubr.msk.f32.mxu0 %vm258_vm0, %v252_v6 }
  0x50   : > { %2592 = vmatmul.mubr.msk.f32.gmra.mxu0 %vm258_vm0, %v253_v7 }
  0x51   : > { %2594 = vmatprep.mubr.msk.f32.mxu0 %vm258_vm0, %v254_v8 }
  0x54   : > { %2595 = vmatmul.mubr.msk.f32.gmra.mxu0 %vm258_vm0, %v255_v9 }
  0x55   : > { %2629 = vmatprep.mubr.msk.f32.mxu0 %vm2993_vm1, %v2992_v10 }
 0x108   : > { %v3153_v11 = vpop.f32.mrf.mxu0 }
 0x109   : > { %677 = vrot.lane.b32.xlu0 %v3153_v11, %s2994_s19  ;;  %2598 = vmatpush3.msra.mxu1 %v3153_v11 }
 0x10a   : > { %v3158_v13 = vpop.f32.mrf.mxu0  ;;  %2599 = vmatprep.subr.mxu1 %v2992_v10 }
 0x10b   : > { %675 = vrot.lane.b32.xlu1 %v3158_v13, %s2994_s19  ;;  %2600 = vmatpush3.msra.mxu1 %v3158_v13 }
 0x10c   : > { %v2590_v14 = vpop.f32.mrf.mxu0  ;;  %2604 = vmatprep.subr.mxu1 %v2992_v10  ;;  %2602 = vmatmul.mubr.msk.f32.vlgmr.msra.gmra.mxu1 %vm258_vm0, %v388_v12 }
 0x10d   : > { %1022 = vrot.lane.b32.xlu0 %v3153_v11, %s2995_s20  ;;  %2605 = vmatpush3.msra.mxu1 %v2590_v14 }
 0x10e   : > { %v359_v15 = vpop.f32.mrf.mxu0  ;;  %2606 = vmatprep.subr.mxu1 %v2992_v10  ;;  %2608 = vmatprep.mubr.msk.f32.mxu1 %vm2993_vm1, %v2992_v10 }
 0x10f   : > { %1101 = vrot.lane.b32.xlu1 %v2590_v14, %s2995_s20  ;;  %2607 = vmatpush3.msra.mxu1 %v359_v15 }
 0x110   : > { %v2593_v16 = vpop.f32.mrf.mxu0  ;;  %2611 = vmatprep.subr.mxu1 %v2992_v10  ;;  %2609 = vmatmul.mubr.msk.f32.vlgmr.msra.gmra.mxu1 %vm258_vm0, %v388_v12 }
 0x111   : > { %1329 = vrot.lane.b32.xlu0 %v3153_v11, %s2996_s21  ;;  %2612 = vmatpush3.msra.mxu1 %v2593_v16 }
 0x112   : > { %v369_v17 = vpop.f32.mrf.mxu0  ;;  %2613 = vmatprep.subr.mxu1 %v2992_v10  ;;  %2615 = vmatprep.mubr.msk.f32.mxu1 %vm2993_vm1, %v2992_v10 }
 0x113   : > { %1408 = vrot.lane.b32.xlu1 %v2590_v14, %s2996_s21  ;;  %2614 = vmatpush3.msra.mxu1 %v369_v17 }
 0x114   : > { %v2596_v18 = vpop.f32.mrf.mxu0  ;;  %2618 = vmatprep.subr.mxu1 %v2992_v10  ;;  %2616 = vmatmul.mubr.msk.f32.vlgmr.msra.gmra.mxu1 %vm258_vm0, %v388_v12 }
 0x115   : > { %1020 = vrot.lane.b32.xlu0 %v3158_v13, %s2995_s20  ;;  %2619 = vmatpush3.msra.mxu1 %v2596_v18 }
 0x116   : > { %v379_v19 = vpop.f32.mrf.mxu0  ;;  %2620 = vmatprep.subr.mxu1 %v2992_v10  ;;  %2622 = vmatprep.mubr.msk.f32.mxu1 %vm2993_vm1, %v2992_v10 }
 0x117   : > { %756 = vrot.lane.b32.xlu1 %v359_v15, %s2994_s19  ;;  %2621 = vmatpush3.msra.mxu1 %v379_v19 }
 0x118   : > { %2632 = vmatprep.subr.mxu1 %v2992_v10  ;;  %2623 = vmatmul.mubr.msk.f32.vlgmr.msra.gmra.mxu1 %vm258_vm0, %v388_v12 }
 0x119   : > { %1327 = vrot.lane.b32.xlu0 %v3158_v13, %s2996_s21  ;;  %2636 = vmatprep.mubr.msk.f32.mxu1 %vm2993_vm1, %v2992_v10 }
 0x11b   : > { %1099 = vrot.lane.b32.xlu1 %v359_v15, %s2995_s20 }
 0x11d   : > { %758 = vrot.lane.b32.xlu0 %v2590_v14, %s2994_s19 }
 0x11f   : > { %1406 = vrot.lane.b32.xlu1 %v359_v15, %s2996_s21 }
 0x121   : > { %836 = vrot.lane.b32.xlu0 %v2593_v16, %s2994_s19 }
 0x123   : > { %914 = vrot.lane.b32.xlu1 %v2596_v18, %s2994_s19 }
 0x125   : > { %1177 = vrot.lane.b32.xlu0 %v2593_v16, %s2995_s20 }
 0x127   : > { %1253 = vrot.lane.b32.xlu1 %v2596_v18, %s2995_s20 }
 0x129   : > { %1484 = vrot.lane.b32.xlu0 %v2593_v16, %s2996_s21 }
 0x12b   : > { %1560 = vrot.lane.b32.xlu1 %v2596_v18, %s2996_s21 }
 0x12d   : > { %834 = vrot.lane.b32.xlu0 %v369_v17, %s2994_s19 }
 0x12f   : > { %912 = vrot.lane.b32.xlu1 %v379_v19, %s2994_s19 }
 0x131   : > { %1668 = vrot.lane.b32.xlu0 %v3153_v11, %s2997_s28 }
 0x133   : > { %1747 = vrot.lane.b32.xlu1 %v2590_v14, %s2997_s28 }
 0x135   : > { %1175 = vrot.lane.b32.xlu0 %v369_v17, %s2995_s20 }
 0x137   : > { %1251 = vrot.lane.b32.xlu1 %v379_v19, %s2995_s20 }
 0x139   : > { %1482 = vrot.lane.b32.xlu0 %v369_v17, %s2996_s21 }
 0x13b   : > { %1745 = vrot.lane.b32.xlu1 %v359_v15, %s2997_s28 }
 0x13d   : > { %1666 = vrot.lane.b32.xlu0 %v3158_v13, %s2997_s28 }
 0x13f   : > { %1558 = vrot.lane.b32.xlu1 %v379_v19, %s2996_s21 }
 0x141   : > { %1823 = vrot.lane.b32.xlu0 %v2593_v16, %s2997_s28 }
 0x143   : > { %1899 = vrot.lane.b32.xlu1 %v2596_v18, %s2997_s28 }
 0x145   : > { %1821 = vrot.lane.b32.xlu0 %v369_v17, %s2997_s28 }
 0x147   : > { %1897 = vrot.lane.b32.xlu1 %v379_v19, %s2997_s28 }
 0x149   : > { %1975 = vrot.lane.b32.xlu0 %v3153_v11, %s2998_s29 }
 0x14b   : > { %2054 = vrot.lane.b32.xlu1 %v2590_v14, %s2998_s29 }
 0x14d   : > { %1973 = vrot.lane.b32.xlu0 %v3158_v13, %s2998_s29 }
 0x14f   : > { %2052 = vrot.lane.b32.xlu1 %v359_v15, %s2998_s29 }
 0x151   : > { %2130 = vrot.lane.b32.xlu0 %v2593_v16, %s2998_s29 }
 0x153   : > { %2206 = vrot.lane.b32.xlu1 %v2596_v18, %s2998_s29 }
 0x155   : > { %2128 = vrot.lane.b32.xlu0 %v369_v17, %s2998_s29 }
 0x157   : > { %2204 = vrot.lane.b32.xlu1 %v379_v19, %s2998_s29 }
 0x17b   : > { %v678_v20 = vpop.permute.xlu0 %677 }
 0x17c   : > { %2626 = vmatpush3.msra.mxu0 %v678_v20 }
 0x17d   : > { %2627 = vmatprep.subr.mxu0 %v2992_v10  ;;  %v676_v22 = vpop.permute.xlu1 %675 }
 0x17e   : > { %2628 = vmatpush3.msra.mxu0 %v676_v22 }
 0x17f   : > { %v1023_v23 = vpop.permute.xlu0 %1022  ;;  %2639 = vmatprep.subr.mxu0 %v2992_v10  ;;  %2630 = vmatmul.mubr.msk.f32.vlgmr.msra.gmra.mxu0 %vm258_vm0, %v389_v21 }
 0x180   : > { %2643 = vmatprep.mubr.msk.f32.mxu0 %vm2993_vm1, %v2992_v10 }
 0x181   : > { %v1102_v24 = vpop.permute.xlu1 %1101 }
 0x183   : > { %v1330_v25 = vpop.permute.xlu0 %1329 }
 0x185   : > { %v3218_v26 = vpop.permute.xlu1 %1408 }
 0x187   : > { %v1021_v27 = vpop.permute.xlu0 %1020 }
 0x189   : > { %v757_v28 = vpop.permute.xlu1 %756 }
 0x18b   : > { %v1328_v29 = vpop.permute.xlu0 %1327 }
 0x18d   : > { %v1100_v30 = vpop.permute.xlu1 %1099 }
 0x18f   : > { %v759_v31 = vpop.permute.xlu0 %758 }
 0x190   : > { %2633 = vmatpush3.msra.mxu1 %v759_v31 }
 0x191   : > { %v3220_v32 = vpop.permute.xlu1 %1406  ;;  %2634 = vmatprep.subr.mxu1 %v2992_v10 }
 0x192   : > { %2635 = vmatpush3.msra.mxu1 %v757_v28 }
 0x193   : > { %v837_v33 = vpop.permute.xlu0 %836  ;;  %2646 = vmatprep.subr.mxu1 %v2992_v10  ;;  %2637 = vmatmul.mubr.msk.f32.vlgmr.msra.gmra.mxu1 %vm258_vm0, %v389_v21 }
 0x194   : > { %2640 = vmatpush3.msra.mxu0 %v837_v33  ;;  %2650 = vmatprep.mubr.msk.f32.mxu1 %vm2993_vm1, %v2992_v10 }
 0x195   : > { %v915_v34 = vpop.permute.xlu1 %914  ;;  %2641 = vmatprep.subr.mxu0 %v2992_v10 }
 0x196   : > { %2647 = vmatpush3.msra.mxu1 %v915_v34 }
 0x197   : > { %v1178_v35 = vpop.permute.xlu0 %1177  ;;  %2648 = vmatprep.subr.mxu1 %v2992_v10 }
 0x199   : > { %v1254_v36 = vpop.permute.xlu1 %1253 }
 0x19b   : > { %v1485_v37 = vpop.permute.xlu0 %1484 }
 0x19d   : > { %v1561_v38 = vpop.permute.xlu1 %1560 }
 0x19f   : > { %v835_v39 = vpop.permute.xlu0 %834 }
 0x1a0   : > { %2642 = vmatpush3.msra.mxu0 %v835_v39 }
 0x1a1   : > { %2653 = vmatprep.subr.mxu0 %v2992_v10  ;;  %v913_v40 = vpop.permute.xlu1 %912  ;;  %2644 = vmatmul.mubr.msk.f32.vlgmr.msra.gmra.mxu0 %vm258_vm0, %v389_v21 }
 0x1a2   : > { %2649 = vmatpush3.msra.mxu1 %v913_v40  ;;  %2654 = vmatpush3.msra.mxu0 %v1023_v23 }
 0x1a3   : > { %2655 = vmatprep.subr.mxu0 %v2992_v10  ;;  %v1669_v41 = vpop.permute.xlu0 %1668  ;;  %2651 = vmatmul.mubr.msk.f32.vlgmr.msra.gmra.mxu1 %vm258_vm0, %v389_v21 }
 0x1a4   : > { %2660 = vmatprep.subr.mxu1 %v2992_v10  ;;  %2656 = vmatpush3.msra.mxu0 %v1021_v27 }
 0x1a5   : > { %2661 = vmatpush3.msra.mxu1 %v1102_v24  ;;  %2657 = vmatprep.mubr.msk.f32.mxu0 %vm2993_vm1, %v2992_v10  ;;  %v1748_v43 = vpop.permute.xlu1 %1747 }
 0x1a6   : > { %2667 = vmatprep.subr.mxu0 %v2992_v10  ;;  %2662 = vmatprep.subr.mxu1 %v2992_v10 }
 0x1a7   : > { %2658 = vmatmul.mubr.msk.f32.vlgmr.msra.gmra.mxu0 %vm258_vm0, %v1018_v42  ;;  %2663 = vmatpush3.msra.mxu1 %v1100_v30  ;;  %v1176_v44 = vpop.permute.xlu0 %1175 }
 0x1a8   : > { %2664 = vmatprep.mubr.msk.f32.mxu1 %vm2993_vm1, %v2992_v10  ;;  %2668 = vmatpush3.msra.mxu0 %v1178_v35 }
 0x1a9   : > { %2669 = vmatprep.subr.mxu0 %v2992_v10  ;;  %2665 = vmatmul.mubr.msk.f32.vlgmr.msra.gmra.mxu1 %vm258_vm0, %v1018_v42  ;;  %v1252_v45 = vpop.permute.xlu1 %1251 }
 0x1aa   : > { %2674 = vmatprep.subr.mxu1 %v2992_v10  ;;  %2670 = vmatpush3.msra.mxu0 %v1176_v44 }
 0x1ab   : > { %2675 = vmatpush3.msra.mxu1 %v1254_v36  ;;  %2671 = vmatprep.mubr.msk.f32.mxu0 %vm2993_vm1, %v2992_v10  ;;  %v1483_v46 = vpop.permute.xlu0 %1482 }
 0x1ac   : > { %2681 = vmatprep.subr.mxu0 %v2992_v10  ;;  %2676 = vmatprep.subr.mxu1 %v2992_v10 }
 0x1ad   : > { %2672 = vmatmul.mubr.msk.f32.vlgmr.msra.gmra.mxu0 %vm258_vm0, %v1018_v42  ;;  %2677 = vmatpush3.msra.mxu1 %v1252_v45  ;;  %v1746_v47 = vpop.permute.xlu1 %1745 }
 0x1ae   : > { %2678 = vmatprep.mubr.msk.f32.mxu1 %vm2993_vm1, %v2992_v10  ;;  %2682 = vmatpush3.msra.mxu0 %v1330_v25 }
 0x1af   : > { %2683 = vmatprep.subr.mxu0 %v2992_v10  ;;  %2679 = vmatmul.mubr.msk.f32.vlgmr.msra.gmra.mxu1 %vm258_vm0, %v1018_v42  ;;  %v1667_v48 = vpop.permute.xlu0 %1666 }
 0x1b0   : > { %2688 = vmatprep.subr.mxu1 %v2992_v10  ;;  %2684 = vmatpush3.msra.mxu0 %v1328_v29 }
 0x1b1   : > { %2689 = vmatpush3.msra.mxu1 %v3218_v26  ;;  %2685 = vmatprep.mubr.msk.f32.mxu0 %vm2993_vm1, %v2992_v10  ;;  %v1559_v50 = vpop.permute.xlu1 %1558 }
 0x1b2   : > { %2695 = vmatprep.subr.mxu0 %v2992_v10  ;;  %2690 = vmatprep.subr.mxu1 %v2992_v10 }
 0x1b3   : > { %2686 = vmatmul.mubr.msk.f32.vlgmr.msra.gmra.mxu0 %vm258_vm0, %v1019_v49  ;;  %2691 = vmatpush3.msra.mxu1 %v3220_v32  ;;  %v1824_v51 = vpop.permute.xlu0 %1823 }
 0x1b4   : > { %2692 = vmatprep.mubr.msk.f32.mxu1 %vm2993_vm1, %v2992_v10  ;;  %2696 = vmatpush3.msra.mxu0 %v1485_v37 }
 0x1b5   : > { %2697 = vmatprep.subr.mxu0 %v2992_v10  ;;  %2693 = vmatmul.mubr.msk.f32.vlgmr.msra.gmra.mxu1 %vm258_vm0, %v1019_v49  ;;  %v1900_v52 = vpop.permute.xlu1 %1899 }
 0x1b6   : > { %2702 = vmatprep.subr.mxu1 %v2992_v10  ;;  %2698 = vmatpush3.msra.mxu0 %v1483_v46 }
 0x1b7   : > { %2703 = vmatpush3.msra.mxu1 %v1561_v38  ;;  %2699 = vmatprep.mubr.msk.f32.mxu0 %vm2993_vm1, %v2992_v10  ;;  %v1822_v53 = vpop.permute.xlu0 %1821 }
 0x1b8   : > { %2709 = vmatprep.subr.mxu0 %v2992_v10  ;;  %2704 = vmatprep.subr.mxu1 %v2992_v10 }
 0x1b9   : > { %2700 = vmatmul.mubr.msk.f32.vlgmr.msra.gmra.mxu0 %vm258_vm0, %v1019_v49  ;;  %2705 = vmatpush3.msra.mxu1 %v1559_v50  ;;  %v1898_v54 = vpop.permute.xlu1 %1897 }
 0x1ba   : > { %2706 = vmatprep.mubr.msk.f32.mxu1 %vm2993_vm1, %v2992_v10  ;;  %2710 = vmatpush3.msra.mxu0 %v1669_v41 }
 0x1bb   : > { %2711 = vmatprep.subr.mxu0 %v2992_v10  ;;  %2707 = vmatmul.mubr.msk.f32.vlgmr.msra.gmra.mxu1 %vm258_vm0, %v1019_v49  ;;  %v1976_v55 = vpop.permute.xlu0 %1975 }
 0x1bc   : > { %2716 = vmatprep.subr.mxu1 %v2992_v10  ;;  %2712 = vmatpush3.msra.mxu0 %v1667_v48 }
 0x1bd   : > { %2717 = vmatpush3.msra.mxu1 %v1748_v43  ;;  %2713 = vmatprep.mubr.msk.f32.mxu0 %vm2993_vm1, %v2992_v10  ;;  %v2055_v57 = vpop.permute.xlu1 %2054 }
 0x1be   : > { %2723 = vmatprep.subr.mxu0 %v2992_v10  ;;  %2718 = vmatprep.subr.mxu1 %v2992_v10 }
 0x1bf   : > { %2714 = vmatmul.mubr.msk.f32.vlgmr.msra.gmra.mxu0 %vm258_vm0, %v1664_v56  ;;  %2719 = vmatpush3.msra.mxu1 %v1746_v47  ;;  %v1974_v58 = vpop.permute.xlu0 %1973 }
 0x1c0   : > { %2720 = vmatprep.mubr.msk.f32.mxu1 %vm2993_vm1, %v2992_v10  ;;  %2724 = vmatpush3.msra.mxu0 %v1824_v51 }
 0x1c1   : > { %2725 = vmatprep.subr.mxu0 %v2992_v10  ;;  %2721 = vmatmul.mubr.msk.f32.vlgmr.msra.gmra.mxu1 %vm258_vm0, %v1664_v56  ;;  %v2053_v59 = vpop.permute.xlu1 %2052 }
 0x1c2   : > { %2730 = vmatprep.subr.mxu1 %v2992_v10  ;;  %2726 = vmatpush3.msra.mxu0 %v1822_v53 }
 0x1c3   : > { %2731 = vmatpush3.msra.mxu1 %v1900_v52  ;;  %2727 = vmatprep.mubr.msk.f32.mxu0 %vm2993_vm1, %v2992_v10  ;;  %v2131_v60 = vpop.permute.xlu0 %2130 }
 0x1c4   : > { %2732 = vmatprep.subr.mxu1 %v2992_v10  ;;  %2728 = vmatmul.mubr.msk.f32.vlgmr.msra.gmra.mxu0 %vm258_vm0, %v1664_v56 }
 0x1c5   : > { %2733 = vmatpush3.msra.mxu1 %v1898_v54  ;;  %2734 = vmatprep.mubr.msk.f32.mxu1 %vm2993_vm1, %v2992_v10  ;;  %v2207_v61 = vpop.permute.xlu1 %2206 }
 0x1c6   : > { %2737 = vmatprep.subr.mxu0 %v2992_v10  ;;  %2735 = vmatmul.mubr.msk.f32.vlgmr.msra.gmra.mxu1 %vm258_vm0, %v1664_v56 }
 0x1c7   : > { %2738 = vmatpush3.msra.mxu0 %v1976_v55  ;;  %2744 = vmatprep.subr.mxu1 %v2992_v10  ;;  %v2129_v63 = vpop.permute.xlu0 %2128 }
 0x1c8   : > { %2745 = vmatpush3.msra.mxu1 %v2055_v57  ;;  %2739 = vmatprep.subr.mxu0 %v2992_v10 }
 0x1c9   : > { %2740 = vmatpush3.msra.mxu0 %v1974_v58  ;;  %2746 = vmatprep.subr.mxu1 %v2992_v10  ;;  %v2205_v1 = vpop.permute.xlu1 %2204 }
 0x1ca   : > { %2747 = vmatpush3.msra.mxu1 %v2053_v59  ;;  %2741 = vmatprep.mubr.msk.f32.mxu0 %vm2993_vm1, %v2992_v10 }
 0x1cb   : > { %2751 = vmatprep.subr.mxu0 %v2992_v10  ;;  %2742 = vmatmul.mubr.msk.f32.vlgmr.msra.gmra.mxu0 %vm258_vm0, %v1665_v62 }
 0x1cc   : > { %2752 = vmatpush3.msra.mxu0 %v2131_v60  ;;  %2748 = vmatprep.mubr.msk.f32.mxu1 %vm2993_vm1, %v2992_v10  ;;  %v459_v0 = vpop.f32.mrf.mxu1 }
 0x1cd   : > { %2758 = vmatprep.subr.mxu1 %v2992_v10  ;;  %2749 = vmatmul.mubr.msk.f32.vlgmr.msra.gmra.mxu1 %vm258_vm0, %v1665_v62  ;;  %1005 = vst.msk [vmem:[%s3304_s26] sm:$0xff] %vm1004_vm2, %v459_v0 }
 0x1ce   : > { %2759 = vmatpush3.msra.mxu1 %v2207_v61  ;;  %2753 = vmatprep.subr.mxu0 %v2992_v10  ;;  %v2603_v2 = vpop.f32.mrf.mxu1 }
 0x1cf   : > { %2754 = vmatpush3.msra.mxu0 %v2129_v63  ;;  %2760 = vmatprep.subr.mxu1 %v2992_v10 }
 0x1d0   : > { %2761 = vmatpush3.msra.mxu1 %v2205_v1  ;;  %2755 = vmatprep.mubr.msk.f32.mxu0 %vm2993_vm1, %v2992_v10  ;;  %v529_v3 = vpop.f32.mrf.mxu1 }
 0x1d1   : > { %2762 = vmatprep.mubr.msk.f32.mxu1 %vm2993_vm1, %v2992_v10  ;;  %2756 = vmatmul.mubr.msk.f32.vlgmr.msra.gmra.mxu0 %vm258_vm0, %v1665_v62  ;;  %1008 = vst.msk [vmem:[%s3304_s26 + $0x18] sm:$0xff] %vm1004_vm2, %v529_v3 }
 0x1d2   : > { %2763 = vmatmul.mubr.msk.f32.vlgmr.msra.gmra.mxu1 %vm258_vm0, %v1665_v62  ;;  %992 = vrot.lane.b32.xlu0 %v459_v0, %s2994_s19  ;;  %v2610_v4 = vpop.f32.mrf.mxu1 }
 0x1d3   : > { %994 = vrot.lane.b32.xlu1 %v529_v3, %s2994_s19 }
 0x1d4   : > { %v599_v5 = vpop.f32.mrf.mxu1 }
 0x1d5   : > { %1011 = vst.msk [vmem:[%s3304_s26 + $0x30] sm:$0xff] %vm1004_vm2, %v599_v5 }
 0x1d6   : > { %v2617_v6 = vpop.f32.mrf.mxu1  ;;  %996 = vrot.lane.b32.xlu0 %v599_v5, %s2994_s19 }
 0x1d8   : > { %v669_v7 = vpop.f32.mrf.mxu1 }
 0x1d9   : > { %1014 = vst.msk [vmem:[%s3304_s26 + $0x48] sm:$0xff] %vm1004_vm2, %v669_v7  ;;  %998 = vrot.lane.b32.xlu1 %v669_v7, %s2994_s19 }
 0x1da   : > { %v2624_v8 = vpop.f32.mrf.mxu1 }
 0x23f   : > { %v750_v9 = vpop.f32.mrf.mxu0 }
 0x240   : > { %1006 = vst.msk [vmem:[%s3304_s26 + $0x8] sm:$0xff] %vm1004_vm2, %v750_v9 }
 0x241   : > { %v2631_v10 = vpop.f32.mrf.mxu0 }
 0x244   : > { %v993_v11 = vpop.permute.xlu0 %992 }
 0x245   : > { %1007 = vst.msk [vmem:[%s3304_s26 + $0x10] sm:$0xff] %vm1004_vm2, %v993_v11  ;;  %v995_v12 = vpop.permute.xlu1 %994 }
 0x246   : > { %1010 = vst.msk [vmem:[%s3304_s26 + $0x28] sm:$0xff] %vm1004_vm2, %v995_v12 }
 0x248   : > { %v997_v13 = vpop.permute.xlu0 %996 }
 0x249   : > { %1013 = vst.msk [vmem:[%s3304_s26 + $0x40] sm:$0xff] %vm1004_vm2, %v997_v13 }
 0x24b   : > { %v999_v14 = vpop.permute.xlu1 %998 }
 0x24c   : > { %1016 = vst.msk [vmem:[%s3304_s26 + $0x58] sm:$0xff] %vm1004_vm2, %v999_v14 }
 0x253   : > { %v828_v15 = vpop.f32.mrf.mxu1 }
 0x254   : > { %1009 = vst.msk [vmem:[%s3304_s26 + $0x20] sm:$0xff] %vm1004_vm2, %v828_v15 }
 0x255   : > { %v2638_v16 = vpop.f32.mrf.mxu1 }
 0x261   : > { %v906_v17 = vpop.f32.mrf.mxu0 }
 0x262   : > { %1012 = vst.msk [vmem:[%s3304_s26 + $0x38] sm:$0xff] %vm1004_vm2, %v906_v17 }
 0x263   : > { %v984_v18 = vpop.f32.mrf.mxu1  ;;  %v2645_v19 = vpop.f32.mrf.mxu0 }
 0x264   : > { %1015 = vst.msk [vmem:[%s3304_s26 + $0x50] sm:$0xff] %vm1004_vm2, %v984_v18 }
 0x265   : > { %v2652_v20 = vpop.f32.mrf.mxu1 }
 0x267   : > { %v1095_v21 = vpop.f32.mrf.mxu0 }
 0x268   : > { %2464 = vst.msk [vmem:[%s3304_s26 + $0x60] sm:$0xff] %vm1004_vm2, %v1095_v21  ;;  %1638 = vrot.lane.b32.xlu0 %v1095_v21, %s2994_s19 }
 0x269   : > { %v1171_v22 = vpop.f32.mrf.mxu1  ;;  %v2659_v23 = vpop.f32.mrf.mxu0 }
 0x26a   : > { %2467 = vst.msk [vmem:[%s3304_s26 + $0x78] sm:$0xff] %vm1004_vm2, %v1171_v22  ;;  %1640 = vrot.lane.b32.xlu1 %v1171_v22, %s2994_s19 }
 0x26b   : > { %v2666_v24 = vpop.f32.mrf.mxu1 }
 0x26d   : > { %v1247_v25 = vpop.f32.mrf.mxu0 }
 0x26e   : > { %2470 = vst.msk [vmem:[%s3304_s26 + $0x90] sm:$0xff] %vm1004_vm2, %v1247_v25  ;;  %1642 = vrot.lane.b32.xlu0 %v1247_v25, %s2994_s19 }
 0x26f   : > { %v1323_v26 = vpop.f32.mrf.mxu1  ;;  %v2673_v27 = vpop.f32.mrf.mxu0 }
 0x270   : > { %2473 = vst.msk [vmem:[%s3304_s26 + $0xa8] sm:$0xff] %vm1004_vm2, %v1323_v26  ;;  %1644 = vrot.lane.b32.xlu1 %v1323_v26, %s2994_s19 }
 0x271   : > { %v2680_v28 = vpop.f32.mrf.mxu1 }
 0x273   : > { %v1402_v29 = vpop.f32.mrf.mxu0 }
 0x274   : > { %2465 = vst.msk [vmem:[%s3304_s26 + $0x68] sm:$0xff] %vm1004_vm2, %v1402_v29 }
 0x275   : > { %v1478_v30 = vpop.f32.mrf.mxu1  ;;  %v2687_v31 = vpop.f32.mrf.mxu0 }
 0x276   : > { %2468 = vst.msk [vmem:[%s3304_s26 + $0x80] sm:$0xff] %vm1004_vm2, %v1478_v30 }
 0x277   : > { %v2694_v32 = vpop.f32.mrf.mxu1 }
 0x279   : > { %v1554_v33 = vpop.f32.mrf.mxu0 }
 0x27a   : > { %2471 = vst.msk [vmem:[%s3304_s26 + $0x98] sm:$0xff] %vm1004_vm2, %v1554_v33 }
 0x27b   : > { %v1630_v34 = vpop.f32.mrf.mxu1  ;;  %v2701_v35 = vpop.f32.mrf.mxu0 }
 0x27c   : > { %2474 = vst.msk [vmem:[%s3304_s26 + $0xb0] sm:$0xff] %vm1004_vm2, %v1630_v34 }
 0x27d   : > { %v2708_v36 = vpop.f32.mrf.mxu1 }
 0x27f   : > { %v1741_v37 = vpop.f32.mrf.mxu0 }
 0x280   : > { %2484 = vst.msk [vmem:[%s3304_s26 + $0xc0] sm:$0xff] %vm1004_vm2, %v1741_v37  ;;  %2284 = vrot.lane.b32.xlu0 %v1741_v37, %s2994_s19 }
 0x281   : > { %v1817_v38 = vpop.f32.mrf.mxu1  ;;  %v2715_v39 = vpop.f32.mrf.mxu0 }
 0x282   : > { %2487 = vst.msk [vmem:[%s3304_s26 + $0xd8] sm:$0xff] %vm1004_vm2, %v1817_v38  ;;  %2286 = vrot.lane.b32.xlu1 %v1817_v38, %s2994_s19 }
 0x283   : > { %v2722_v40 = vpop.f32.mrf.mxu1 }
 0x284   : > { %v1893_v41 = vpop.f32.mrf.mxu0 }
 0x285   : > { %2490 = vst.msk [vmem:[%s3304_s26 + $0xf0] sm:$0xff] %vm1004_vm2, %v1893_v41  ;;  %2288 = vrot.lane.b32.xlu0 %v1893_v41, %s2994_s19 }
 0x286   : > { %v1969_v42 = vpop.f32.mrf.mxu1  ;;  %v2729_v43 = vpop.f32.mrf.mxu0 }
 0x287   : > { %2493 = vst.msk [vmem:[%s3304_s26 + $0x108] sm:$0xff] %vm1004_vm2, %v1969_v42  ;;  %2290 = vrot.lane.b32.xlu1 %v1969_v42, %s2994_s19 }
 0x288   : > { %v2736_v44 = vpop.f32.mrf.mxu1 }
 0x28b   : > { %v2048_v45 = vpop.f32.mrf.mxu0 }
 0x28c   : > { %2485 = vst.msk [vmem:[%s3304_s26 + $0xc8] sm:$0xff] %vm1004_vm2, %v2048_v45 }
 0x28d   : > { %v2124_v46 = vpop.f32.mrf.mxu1  ;;  %v2743_v47 = vpop.f32.mrf.mxu0 }
 0x28e   : > { %2488 = vst.msk [vmem:[%s3304_s26 + $0xe0] sm:$0xff] %vm1004_vm2, %v2124_v46 }
 0x28f   : > { %v2750_v48 = vpop.f32.mrf.mxu1 }
 0x291   : > { %v2200_v49 = vpop.f32.mrf.mxu0 }
 0x292   : > { %2491 = vst.msk [vmem:[%s3304_s26 + $0xf8] sm:$0xff] %vm1004_vm2, %v2200_v49  ;;  %v2276_v50 = vpop.f32.mrf.mxu1 }
 0x293   : > { %2494 = vst.msk [vmem:[%s3304_s26 + $0x110] sm:$0xff] %vm1004_vm2, %v2276_v50  ;;  %v2757_v51 = vpop.f32.mrf.mxu0 }
 0x294   : > { %v2764_v52 = vpop.f32.mrf.mxu1 }
 0x2da   : > { %v1639_v53 = vpop.permute.xlu0 %1638 }
 0x2db   : > { %2466 = vst.msk [vmem:[%s3304_s26 + $0x70] sm:$0xff] %vm1004_vm2, %v1639_v53 }
 0x2dc   : > { %v1641_v54 = vpop.permute.xlu1 %1640 }
 0x2dd   : > { %2469 = vst.msk [vmem:[%s3304_s26 + $0x88] sm:$0xff] %vm1004_vm2, %v1641_v54 }
 0x2e0   : > { %v1643_v55 = vpop.permute.xlu0 %1642 }
 0x2e1   : > { %2472 = vst.msk [vmem:[%s3304_s26 + $0xa0] sm:$0xff] %vm1004_vm2, %v1643_v55 }
 0x2e2   : > { %v1645_v56 = vpop.permute.xlu1 %1644 }
 0x2e3   : > { %2475 = vst.msk [vmem:[%s3304_s26 + $0xb8] sm:$0xff] %vm1004_vm2, %v1645_v56 }
 0x2f2   : > { %v2285_v57 = vpop.permute.xlu0 %2284 }
 0x2f3   : > { %2486 = vst.msk [vmem:[%s3304_s26 + $0xd0] sm:$0xff] %vm1004_vm2, %v2285_v57 }
 0x2f4   : > { %v2287_v58 = vpop.permute.xlu1 %2286 }
 0x2f5   : > { %2489 = vst.msk [vmem:[%s3304_s26 + $0xe8] sm:$0xff] %vm1004_vm2, %v2287_v58 }
 0x2f7   : > { %v2289_v59 = vpop.permute.xlu0 %2288 }
 0x2f8   : > { %2492 = vst.msk [vmem:[%s3304_s26 + $0x100] sm:$0xff] %vm1004_vm2, %v2289_v59 }
 0x2f9   : > { %v2291_v60 = vpop.permute.xlu1 %2290 }
 0x2fa   : > { %2495 = vst.msk [vmem:[%s3304_s26 + $0x118] sm:$0xff] %vm1004_vm2, %v2291_v60 }
 0x2fb PF: > { %s17_s17 = sadd.s32 1, %s2985_s17   ;;  %s3431_s12 = smov %s2969_s13 }
 0x2fc   : > { %p14_p4 = scmp.ge.s32.totalorder %s17_s17, 4   ;;  %s3432_s13 = smov %s2973_s14 }
 0x2fd   : > { %s3433_s14 = smov %s3110_s22  ;;  %s3434_s15 = smov %s2981_s16 }
 0x2fe   : > { %s3435_s16 = smov %s3437_s8  ;;  %16 = sbr.rel (!%p14_p4) target bundleno = 5 (0x5), region = 84 }
 0x303   :  { %2338 = vsyncpa [#allocation3], 1 }
 0x304   :  { %2340 = vsyncpa [#allocation3 + $0x1], 1 }
 0x305   :  { %2341 = vsyncpa [#allocation5], 1 }

</bundles_post_ra>
